<compile_context>
chip_gen: v7x
topology: tpu7x:2x2x1
jax: 0.10.0
libtpu: 0.0.40
codegen_flags: <defaults>
</compile_context>

<pallas_src>
import jax
import jax.numpy as jnp
from jax.experimental import pallas as pl
from jax.experimental.pallas import tpu as pltpu


def _mingru_kernel(x_ref, w_ref, o_ref, h_ref):
    # x_ref : (bt, tc, D)      w_ref : (D, 2*et)   [W_k^T tile | W_h^T tile]
    # o_ref : (bt, tc, et)     h_ref : (bt, 1, et) f32 hidden-state carry (scratch)
    t_idx = pl.program_id(2)

    @pl.when(t_idx == 0)
    def _init_carry():
        # h0 = g(0) = 0.5  (module's self.log_h = log_g(zeros))
        h_ref[...] = jnp.full(h_ref.shape, 0.5, dtype=jnp.float32)

    bt, tc, d = x_ref.shape
    et = o_ref.shape[-1]
    m = bt * tc

    # ---- fused input projection on the MXU: M = bt*tc rows, one weight block -------
    x = x_ref[...].reshape(m, d)
    kh = jnp.dot(x, w_ref[...], preferred_element_type=jnp.float32)     # (m, 2*et) f32
    k = kh[:, :et]
    h_x = kh[:, et:]

    # ---- gates in direct space (numerically stable, one exp per gate) --------------
    ek = jnp.exp(-jnp.abs(k))
    sk = ek / (1.0 + ek)                            # sigmoid(-|k|)
    z = jnp.where(k >= 0.0, 1.0 - sk, sk)           # sigmoid(k)
    c = jnp.where(k >= 0.0, sk, 1.0 - sk)           # sigmoid(-k) = 1 - z, no cancellation

    eh = jnp.exp(-jnp.abs(h_x))
    g = jnp.where(h_x >= 0.0, h_x + 0.5, eh / (1.0 + eh))   # relu(x)+0.5  /  sigmoid(x)
    v = z * g

    # ---- batched Hillis-Steele scan of affine maps h -> c*h + v along time ---------
    # Layout (m, et): time on sublanes (local index t within each bt segment), features
    # on lanes.  Shifts are pltpu.roll along sublanes; segment boundaries are masked so
    # batch rows never mix.  log2(tc) steps, all VPU/XLU work (no exp/log, no clamps).
    local_t = jax.lax.broadcasted_iota(jnp.int32, (bt, tc, et), 1).reshape(m, et)
    A = c            # h_t = A_t * h_carry + B_t
    B = v
    shift = 1
    while shift < tc:
        keep = local_t >= shift
        A_sh = jnp.where(keep, pltpu.roll(A, shift, axis=0), 1.0)
        B_sh = jnp.where(keep, pltpu.roll(B, shift, axis=0), 0.0)
        B = A * B_sh + B          # compose (A_sh,B_sh) then (A,B): uses OLD A
        A = A * A_sh
        shift *= 2

    A3 = A.reshape(bt, tc, et)
    B3 = B.reshape(bt, tc, et)
    h_blk = A3 * h_ref[...] + B3                     # broadcast carry over time

    o_ref[...] = h_blk.astype(o_ref.dtype)
    h_ref[...] = h_blk[:, tc - 1:tc, :]              # carry last step to next chunk


# ----------------------------- tiling heuristics -------------------------------------
def _largest_divisor_leq(n, cap):
    cap = max(1, min(n, cap))
    for d in range(cap, 0, -1):
        if n % d == 0:
            return d
    return 1


def _choose_time_chunk(T, cap=128):
    if T <= cap:
        return T
    best_any = None
    for d in range(min(T, cap), 0, -1):
        if T % d == 0:
            if best_any is None:
                best_any = d
            if d % 8 == 0:                     # f32 sublane-aligned chunk preferred
                return d
    return best_any or 1


def _choose_batch_tile(B, tc, target_rows=512):
    cap = max(1, target_rows // tc)
    if B >= 2:
        cap = min(cap, B // 2)                 # keep >= 2 batch-grid steps (v7x megacore)
    return _largest_divisor_leq(B, cap)


def _choose_e_tile(E, cap=512):
    if E <= cap:
        return E
    best_any = None
    for d in range(cap, 0, -1):
        if E % d == 0:
            if best_any is None:
                best_any = d
            if d % 128 == 0:                   # lane-aligned k/h split + dense stores
                return d
    return best_any or E


# ----------------------------------- wrapper ------------------------------------------
def mingru_forward(x, w, *, bt=None, tc=None, et=None,
                   compute_dtype=jnp.float32, out_dtype=jnp.float32,
                   vmem_limit_bytes=None, single_buffer_weights=True,
                   target_rows=512):
    """minGRU forward.

    x: (B, T, D) input sequence.
    w: (2E, D) fused Linear(dim, 2*exp_dim, bias=False) weight, PyTorch layout
       (E == D here: expansion_factor = 1.0 -> down_projection = Identity).
    compute_dtype: dtype fed to the MXU matmul (jnp.bfloat16 for full MXU rate);
       the scan and all gate math stay float32.
    Returns (B, T, E) hidden states in out_dtype.
    """
    B, T, D = x.shape
    two_e, d_in = w.shape
    assert d_in == D and two_e % 2 == 0
    E = two_e // 2

    if tc is None:
        tc = _choose_time_chunk(T)
    if bt is None:
        bt = _choose_batch_tile(B, tc, target_rows)
    if et is None:
        et = _choose_e_tile(E)
    assert T % tc == 0, f"tc={tc} must divide T={T}"
    assert B % bt == 0, f"bt={bt} must divide B={B}"
    assert E % et == 0, f"et={et} must divide E={E}"
    n_et = E // et

    # Weight prep (host side): per-E-tile interleaved [W_k^T tile | W_h^T tile] so each
    # grid E-step loads ONE contiguous (D, 2*et) block holding both halves.
    w = jnp.asarray(w, jnp.float32)
    wk = w[:E, :].T.reshape(D, n_et, 1, et)
    wh = w[E:, :].T.reshape(D, n_et, 1, et)
    w_fused = jnp.concatenate([wk, wh], axis=2).reshape(D, 2 * E).astype(compute_dtype)
    x_c = x.astype(compute_dtype)

    # Explicit scoped-VMEM limit sized from the actual buffers (v5e default is 16 MiB);
    # capped at 64 MiB so the request is valid on every generation incl. v7x.
    comp_bytes = jnp.dtype(compute_dtype).itemsize
    out_bytes = jnp.dtype(out_dtype).itemsize
    x_blk = bt * tc * D * comp_bytes
    w_blk = D * 2 * et * comp_bytes
    o_blk = bt * tc * et * out_bytes
    temps = 12 * bt * tc * et * 4
    need = 2 * x_blk + (1 if single_buffer_weights else 2) * w_blk + 2 * o_blk \
        + bt * et * 4 + temps
    if vmem_limit_bytes is None:
        vmem_limit_bytes = int(min(max(int(need * 1.25), 16 << 20), 64 << 20))

    grid = (B // bt, n_et, T // tc)

    def _build(single_buffer):
        w_kwargs = {}
        if single_buffer:
            # Constant-index weight block: single-buffer it (biggest VMEM lever at
            # large D*E; required to fit v7x's 64 MiB VMEM).
            w_kwargs["pipeline_mode"] = pl.Buffered(1)
        return pl.pallas_call(
            _mingru_kernel,
            out_shape=jax.ShapeDtypeStruct((B, T, E), out_dtype),
            grid_spec=pltpu.PrefetchScalarGridSpec(
                num_scalar_prefetch=0,
                grid=grid,
                in_specs=[
                    pl.BlockSpec((bt, tc, D), lambda b, e, t: (b, t, 0)),
                    pl.BlockSpec((D, 2 * et), lambda b, e, t: (0, e), **w_kwargs),
                ],
                out_specs=pl.BlockSpec((bt, tc, et), lambda b, e, t: (b, t, e)),
                scratch_shapes=[pltpu.VMEM((bt, 1, et), jnp.float32)],
            ),
            compiler_params=pltpu.CompilerParams(
                dimension_semantics=("parallel", "parallel", "arbitrary"),
                vmem_limit_bytes=vmem_limit_bytes,
            ),
        )

    if single_buffer_weights:
        try:
            return _build(True)(x_c, w_fused)
        except Exception:
            pass  # fall back to default double-buffering if Buffered(1) is unsupported
    return _build(False)(x_c, w_fused)


# ----------------------------- pure-JAX reference -------------------------------------
def mingru_reference(x, w):
    """Replica of the PyTorch log-space forward (w in PyTorch layout (2E, D))."""
    E = w.shape[0] // 2
    kh = jnp.einsum("btd,ed->bte", x, w, precision=jax.lax.Precision.HIGHEST)
    k, h_x = kh[..., :E], kh[..., E:]
    log_z = -jax.nn.softplus(-k)
    log_coeffs = -jax.nn.softplus(k)
    log_tilde_h = jnp.where(h_x >= 0, jnp.log(jax.nn.relu(h_x) + 0.5),
                            -jax.nn.softplus(-h_x))
    B, T, _ = x.shape
    log_h0 = jnp.full((B, 1, E), jnp.log(0.5), dtype=x.dtype)
    log_values = jnp.concatenate([log_h0, log_tilde_h + log_z], axis=1)
    a_star = jnp.concatenate(
        [jnp.zeros((B, 1, E), x.dtype), jnp.cumsum(log_coeffs, axis=1)], axis=1)
    log_h = a_star + jax.lax.cumlogsumexp(log_values - a_star, axis=1)
    return jnp.exp(log_h)[:, 1:]


if __name__ == "__main__":
    key = jax.random.PRNGKey(0)

    def make_inputs(k, B, T, D):
        kx, kw = jax.random.split(k)
        x = jax.random.normal(kx, (B, T, D), dtype=jnp.float32)
        bound = 1.0 / (D ** 0.5)   # Linear(dim, 2*dim, bias=False) init range
        w = jax.random.uniform(kw, (2 * D, D), dtype=jnp.float32,
                               minval=-bound, maxval=bound)
        return x, w

    # Config 1: module-consistent small shapes (batch=2, seq=8, dim=32), grid (2,1,1).
    x1, w1 = make_inputs(jax.random.fold_in(key, 0), 2, 8, 32)
    out1 = jax.block_until_ready(mingru_forward(x1, w1, tc=8))
    ref1 = mingru_reference(x1, w1)
    assert out1.shape == ref1.shape
    assert jnp.allclose(out1, ref1, atol=1e-4, rtol=1e-4), \
        float(jnp.max(jnp.abs(out1 - ref1)))

    # Config 2: grid (2,1,2) -> batch tiling + cross-chunk time carry.
    x2, w2 = make_inputs(jax.random.fold_in(key, 1), 4, 16, 32)
    out2 = jax.block_until_ready(mingru_forward(x2, w2, bt=2, tc=8))
    ref2 = mingru_reference(x2, w2)
    assert out2.shape == ref2.shape
    assert jnp.allclose(out2, ref2, atol=1e-4, rtol=1e-4), \
        float(jnp.max(jnp.abs(out2 - ref2)))

    # Config 3: E-tiled grid (4,2,2) -> exercises the feature-tile axis and the
    # per-(b,e) carry reset at t == 0.
    out3 = jax.block_until_ready(mingru_forward(x2, w2, bt=1, tc=8, et=16))
    assert jnp.allclose(out3, ref2, atol=1e-4, rtol=1e-4), \
        float(jnp.max(jnp.abs(out3 - ref2)))

    # Config 4: bfloat16 matmul inputs (MXU fast path); scan/gates stay float32.
    out4 = jax.block_until_ready(
        mingru_forward(x1, w1, tc=8, compute_dtype=jnp.bfloat16))
    assert jnp.allclose(out4, ref1, atol=2e-2, rtol=1e-1), \
        float(jnp.max(jnp.abs(out4 - ref1)))

    print("KERNEL_OK")
</pallas_src>

<mosaic_0001>
module attributes {stable_mosaic.version = 11 : i64} {
  func.func @_mingru_kernel(%arg0: i32, %arg1: i32, %arg2: i32, %arg3: memref<1x8x32xf32, #tpu.memory_space<vmem>>, %arg4: memref<32x64xf32, #tpu.memory_space<vmem>>, %arg5: memref<1x8x32xf32, #tpu.memory_space<vmem>>, %arg6: memref<1x1x32xf32, #tpu.memory_space<vmem>>) attributes {dimension_semantics = [#tpu.dimension_semantics<parallel>, #tpu.dimension_semantics<parallel>, #tpu.dimension_semantics<arbitrary>], iteration_bounds = array<i64: 2, 1, 1>, scalar_prefetch = 0 : i64, scratch_operands = 1 : i64, tpu.core_type = #tpu.core_type<tc>, window_params = [{transform_indices = @transform_0, window_bounds = array<i64: 1, 8, 32>}, {pipeline_mode = #tpu.pipeline_mode<synchronous>, transform_indices = @transform_1, window_bounds = array<i64: 32, 64>}, {transform_indices = @transform_2, window_bounds = array<i64: 1, 8, 32>}]} {
    %c0_i32 = arith.constant 0 : i32
    %0 = arith.cmpi eq, %arg2, %c0_i32 : i32
    %1 = arith.extui %0 : i1 to i32
    %c0_i32_0 = arith.constant 0 : i32
    %2 = arith.cmpi ne, %1, %c0_i32_0 : i32
    scf.if %2 {
      %cst_36 = arith.constant 5.000000e-01 : f32
      %83 = vector.broadcast %cst_36 : f32 to vector<1x1x32xf32>
      %c0_37 = arith.constant 0 : index
      %c0_38 = arith.constant 0 : index
      %c0_39 = arith.constant 0 : index
      %84 = vector.load %arg6[%c0_37, %c0_38, %c0_39] : memref<1x1x32xf32, #tpu.memory_space<vmem>>, vector<1x1x32xf32>
      tpu.vector_store %arg6[%c0_37, %c0_38, %c0_39], %83 {strides = array<i32>} : memref<1x1x32xf32, #tpu.memory_space<vmem>>, vector<1x1x32xf32>,
    } else {
    }
    %c0 = arith.constant 0 : index
    %c0_1 = arith.constant 0 : index
    %c0_2 = arith.constant 0 : index
    %3 = vector.load %arg3[%c0, %c0_1, %c0_2] : memref<1x8x32xf32, #tpu.memory_space<vmem>>, vector<1x8x32xf32>
    %4 = vector.shape_cast %3 : vector<1x8x32xf32> to vector<8x32xf32>
    %c0_3 = arith.constant 0 : index
    %c0_4 = arith.constant 0 : index
    %5 = vector.load %arg4[%c0_3, %c0_4] : memref<32x64xf32, #tpu.memory_space<vmem>>, vector<32x64xf32>
    %cst = arith.constant dense<0.000000e+00> : vector<8x64xf32>
    %6 = tpu.matmul %4, %5, %cst {dimension_numbers = #tpu.dot_dimension_numbers<[1], [0], [0], [1], [0, 0, 1, 1], [], []>} : vector<8x32xf32>, vector<32x64xf32>, vector<8x64xf32> -> vector<8x64xf32>
    %7 = vector.extract_strided_slice %6 {offsets = [0, 0], sizes = [8, 32], strides = [1, 1]} : vector<8x64xf32> to vector<8x32xf32>
    %8 = vector.extract_strided_slice %6 {offsets = [0, 32], sizes = [8, 32], strides = [1, 1]} : vector<8x64xf32> to vector<8x32xf32>
    %9 = math.absf %7 : vector<8x32xf32>
    %cst_5 = arith.constant 0.000000e+00 : f32
    %10 = vector.broadcast %cst_5 : f32 to vector<8x32xf32>
    %11 = arith.subf %10, %9 : vector<8x32xf32>
    %12 = math.exp %11 : vector<8x32xf32>
    %cst_6 = arith.constant 1.000000e+00 : f32
    %13 = vector.broadcast %cst_6 : f32 to vector<8x32xf32>
    %14 = arith.addf %13, %12 : vector<8x32xf32>
    %15 = arith.divf %12, %14 : vector<8x32xf32>
    %cst_7 = arith.constant 0.000000e+00 : f32
    %16 = vector.broadcast %cst_7 : f32 to vector<8x32xf32>
    %17 = arith.cmpf oge, %7, %16 : vector<8x32xf32>
    %cst_8 = arith.constant 1.000000e+00 : f32
    %18 = vector.broadcast %cst_8 : f32 to vector<8x32xf32>
    %19 = arith.subf %18, %15 : vector<8x32xf32>
    %20 = arith.select %17, %19, %15 : vector<8x32xi1>, vector<8x32xf32>
    %cst_9 = arith.constant 0.000000e+00 : f32
    %21 = vector.broadcast %cst_9 : f32 to vector<8x32xf32>
    %22 = arith.cmpf oge, %7, %21 : vector<8x32xf32>
    %cst_10 = arith.constant 1.000000e+00 : f32
    %23 = vector.broadcast %cst_10 : f32 to vector<8x32xf32>
    %24 = arith.subf %23, %15 : vector<8x32xf32>
    %25 = arith.select %22, %15, %24 : vector<8x32xi1>, vector<8x32xf32>
    %26 = math.absf %8 : vector<8x32xf32>
    %cst_11 = arith.constant 0.000000e+00 : f32
    %27 = vector.broadcast %cst_11 : f32 to vector<8x32xf32>
    %28 = arith.subf %27, %26 : vector<8x32xf32>
    %29 = math.exp %28 : vector<8x32xf32>
    %cst_12 = arith.constant 0.000000e+00 : f32
    %30 = vector.broadcast %cst_12 : f32 to vector<8x32xf32>
    %31 = arith.cmpf oge, %8, %30 : vector<8x32xf32>
    %cst_13 = arith.constant 5.000000e-01 : f32
    %32 = vector.broadcast %cst_13 : f32 to vector<8x32xf32>
    %33 = arith.addf %8, %32 : vector<8x32xf32>
    %cst_14 = arith.constant 1.000000e+00 : f32
    %34 = vector.broadcast %cst_14 : f32 to vector<8x32xf32>
    %35 = arith.addf %34, %29 : vector<8x32xf32>
    %36 = arith.divf %29, %35 : vector<8x32xf32>
    %37 = arith.select %31, %33, %36 : vector<8x32xi1>, vector<8x32xf32>
    %38 = arith.mulf %20, %37 : vector<8x32xf32>
    %39 = tpu.iota {dimensions = array<i32: 1>} : vector<1x8x32xi32>
    %40 = vector.shape_cast %39 : vector<1x8x32xi32> to vector<8x32xi32>
    %c1_i32 = arith.constant 1 : i32
    %41 = vector.broadcast %c1_i32 : i32 to vector<8x32xi32>
    %42 = arith.cmpi sge, %40, %41 : vector<8x32xi32>
    %c1_i32_15 = arith.constant 1 : i32
    %43 = tpu.dynamic_rotate %25 by %c1_i32_15 dim 0 : vector<8x32xf32>, i32 -> vector<8x32xf32>
    %cst_16 = arith.constant 1.000000e+00 : f32
    %44 = vector.broadcast %cst_16 : f32 to vector<8x32xf32>
    %45 = arith.select %42, %43, %44 : vector<8x32xi1>, vector<8x32xf32>
    %c1_i32_17 = arith.constant 1 : i32
    %46 = tpu.dynamic_rotate %38 by %c1_i32_17 dim 0 : vector<8x32xf32>, i32 -> vector<8x32xf32>
    %cst_18 = arith.constant 0.000000e+00 : f32
    %47 = vector.broadcast %cst_18 : f32 to vector<8x32xf32>
    %48 = arith.select %42, %46, %47 : vector<8x32xi1>, vector<8x32xf32>
    %49 = arith.mulf %25, %48 : vector<8x32xf32>
    %50 = arith.addf %49, %38 : vector<8x32xf32>
    %51 = arith.mulf %25, %45 : vector<8x32xf32>
    %c2_i32 = arith.constant 2 : i32
    %52 = vector.broadcast %c2_i32 : i32 to vector<8x32xi32>
    %53 = arith.cmpi sge, %40, %52 : vector<8x32xi32>
    %c2_i32_19 = arith.constant 2 : i32
    %54 = tpu.dynamic_rotate %51 by %c2_i32_19 dim 0 : vector<8x32xf32>, i32 -> vector<8x32xf32>
    %cst_20 = arith.constant 1.000000e+00 : f32
    %55 = vector.broadcast %cst_20 : f32 to vector<8x32xf32>
    %56 = arith.select %53, %54, %55 : vector<8x32xi1>, vector<8x32xf32>
    %c2_i32_21 = arith.constant 2 : i32
    %57 = tpu.dynamic_rotate %50 by %c2_i32_21 dim 0 : vector<8x32xf32>, i32 -> vector<8x32xf32>
    %cst_22 = arith.constant 0.000000e+00 : f32
    %58 = vector.broadcast %cst_22 : f32 to vector<8x32xf32>
    %59 = arith.select %53, %57, %58 : vector<8x32xi1>, vector<8x32xf32>
    %60 = arith.mulf %51, %59 : vector<8x32xf32>
    %61 = arith.addf %60, %50 : vector<8x32xf32>
    %62 = arith.mulf %51, %56 : vector<8x32xf32>
    %c4_i32 = arith.constant 4 : i32
    %63 = vector.broadcast %c4_i32 : i32 to vector<8x32xi32>
    %64 = arith.cmpi sge, %40, %63 : vector<8x32xi32>
    %c4_i32_23 = arith.constant 4 : i32
    %65 = tpu.dynamic_rotate %62 by %c4_i32_23 dim 0 : vector<8x32xf32>, i32 -> vector<8x32xf32>
    %cst_24 = arith.constant 1.000000e+00 : f32
    %66 = vector.broadcast %cst_24 : f32 to vector<8x32xf32>
    %67 = arith.select %64, %65, %66 : vector<8x32xi1>, vector<8x32xf32>
    %c4_i32_25 = arith.constant 4 : i32
    %68 = tpu.dynamic_rotate %61 by %c4_i32_25 dim 0 : vector<8x32xf32>, i32 -> vector<8x32xf32>
    %cst_26 = arith.constant 0.000000e+00 : f32
    %69 = vector.broadcast %cst_26 : f32 to vector<8x32xf32>
    %70 = arith.select %64, %68, %69 : vector<8x32xi1>, vector<8x32xf32>
    %71 = arith.mulf %62, %70 : vector<8x32xf32>
    %72 = arith.addf %71, %61 : vector<8x32xf32>
    %73 = arith.mulf %62, %67 : vector<8x32xf32>
    %74 = vector.shape_cast %73 : vector<8x32xf32> to vector<1x8x32xf32>
    %75 = vector.shape_cast %72 : vector<8x32xf32> to vector<1x8x32xf32>
    %c0_27 = arith.constant 0 : index
    %c0_28 = arith.constant 0 : index
    %c0_29 = arith.constant 0 : index
    %76 = vector.load %arg6[%c0_27, %c0_28, %c0_29] : memref<1x1x32xf32, #tpu.memory_space<vmem>>, vector<1x1x32xf32>
    %77 = vector.broadcast %76 : vector<1x1x32xf32> to vector<1x8x32xf32>
    %78 = arith.mulf %74, %77 : vector<1x8x32xf32>
    %79 = arith.addf %78, %75 : vector<1x8x32xf32>
    %c0_30 = arith.constant 0 : index
    %c0_31 = arith.constant 0 : index
    %c0_32 = arith.constant 0 : index
    %80 = vector.load %arg5[%c0_30, %c0_31, %c0_32] : memref<1x8x32xf32, #tpu.memory_space<vmem>>, vector<1x8x32xf32>
    tpu.vector_store %arg5[%c0_30, %c0_31, %c0_32], %79 {strides = array<i32>} : memref<1x8x32xf32, #tpu.memory_space<vmem>>, vector<1x8x32xf32>,
    %81 = vector.extract_strided_slice %79 {offsets = [0, 7, 0], sizes = [1, 1, 32], strides = [1, 1, 1]} : vector<1x8x32xf32> to vector<1x1x32xf32>
    %c0_33 = arith.constant 0 : index
    %c0_34 = arith.constant 0 : index
    %c0_35 = arith.constant 0 : index
    %82 = vector.load %arg6[%c0_33, %c0_34, %c0_35] : memref<1x1x32xf32, #tpu.memory_space<vmem>>, vector<1x1x32xf32>
    tpu.vector_store %arg6[%c0_33, %c0_34, %c0_35], %81 {strides = array<i32>} : memref<1x1x32xf32, #tpu.memory_space<vmem>>, vector<1x1x32xf32>,
    return
  }
  func.func @transform_0(%arg0: i32, %arg1: i32, %arg2: i32) -> (i32, i32, i32) {
    %c0_i32 = arith.constant 0 : i32
    %c0_i32_0 = arith.constant 0 : i32
    return %arg0, %arg2, %c0_i32 : i32, i32, i32
  }
  func.func @transform_1(%arg0: i32, %arg1: i32, %arg2: i32) -> (i32, i32) {
    %c0_i32 = arith.constant 0 : i32
    %c0_i32_0 = arith.constant 0 : i32
    return %c0_i32, %arg1 : i32, i32
  }
  func.func @transform_2(%arg0: i32, %arg1: i32, %arg2: i32) -> (i32, i32, i32) {
    %c0_i32 = arith.constant 0 : i32
    return %arg0, %arg2, %arg1 : i32, i32, i32
  }
}

module attributes {stable_mosaic.version = 11 : i64} {
  func.func @_mingru_kernel(%arg0: i32, %arg1: i32, %arg2: i32, %arg3: memref<1x8x32xf32, #tpu.memory_space<vmem>>, %arg4: memref<32x64xf32, #tpu.memory_space<vmem>>, %arg5: memref<1x8x32xf32, #tpu.memory_space<vmem>>, %arg6: memref<1x1x32xf32, #tpu.memory_space<vmem>>) attributes {dimension_semantics = [#tpu.dimension_semantics<parallel>, #tpu.dimension_semantics<parallel>, #tpu.dimension_semantics<arbitrary>], iteration_bounds = array<i64: 2, 1, 1>, scalar_prefetch = 0 : i64, scratch_operands = 1 : i64, tpu.core_type = #tpu.core_type<tc>, window_params = [{transform_indices = @transform_0, window_bounds = array<i64: 1, 8, 32>}, {transform_indices = @transform_1, window_bounds = array<i64: 32, 64>}, {transform_indices = @transform_2, window_bounds = array<i64: 1, 8, 32>}]} {
    %c0_i32 = arith.constant 0 : i32
    %0 = arith.cmpi eq, %arg2, %c0_i32 : i32
    %1 = arith.extui %0 : i1 to i32
    %c0_i32_0 = arith.constant 0 : i32
    %2 = arith.cmpi ne, %1, %c0_i32_0 : i32
    scf.if %2 {
      %cst_36 = arith.constant 5.000000e-01 : f32
      %83 = vector.broadcast %cst_36 : f32 to vector<1x1x32xf32>
      %c0_37 = arith.constant 0 : index
      %c0_38 = arith.constant 0 : index
      %c0_39 = arith.constant 0 : index
      %84 = vector.load %arg6[%c0_37, %c0_38, %c0_39] : memref<1x1x32xf32, #tpu.memory_space<vmem>>, vector<1x1x32xf32>
      tpu.vector_store %arg6[%c0_37, %c0_38, %c0_39], %83 {strides = array<i32>} : memref<1x1x32xf32, #tpu.memory_space<vmem>>, vector<1x1x32xf32>,
    } else {
    }
    %c0 = arith.constant 0 : index
    %c0_1 = arith.constant 0 : index
    %c0_2 = arith.constant 0 : index
    %3 = vector.load %arg3[%c0, %c0_1, %c0_2] : memref<1x8x32xf32, #tpu.memory_space<vmem>>, vector<1x8x32xf32>
    %4 = vector.shape_cast %3 : vector<1x8x32xf32> to vector<8x32xf32>
    %c0_3 = arith.constant 0 : index
    %c0_4 = arith.constant 0 : index
    %5 = vector.load %arg4[%c0_3, %c0_4] : memref<32x64xf32, #tpu.memory_space<vmem>>, vector<32x64xf32>
    %cst = arith.constant dense<0.000000e+00> : vector<8x64xf32>
    %6 = tpu.matmul %4, %5, %cst {dimension_numbers = #tpu.dot_dimension_numbers<[1], [0], [0], [1], [0, 0, 1, 1], [], []>} : vector<8x32xf32>, vector<32x64xf32>, vector<8x64xf32> -> vector<8x64xf32>
    %7 = vector.extract_strided_slice %6 {offsets = [0, 0], sizes = [8, 32], strides = [1, 1]} : vector<8x64xf32> to vector<8x32xf32>
    %8 = vector.extract_strided_slice %6 {offsets = [0, 32], sizes = [8, 32], strides = [1, 1]} : vector<8x64xf32> to vector<8x32xf32>
    %9 = math.absf %7 : vector<8x32xf32>
    %cst_5 = arith.constant 0.000000e+00 : f32
    %10 = vector.broadcast %cst_5 : f32 to vector<8x32xf32>
    %11 = arith.subf %10, %9 : vector<8x32xf32>
    %12 = math.exp %11 : vector<8x32xf32>
    %cst_6 = arith.constant 1.000000e+00 : f32
    %13 = vector.broadcast %cst_6 : f32 to vector<8x32xf32>
    %14 = arith.addf %13, %12 : vector<8x32xf32>
    %15 = arith.divf %12, %14 : vector<8x32xf32>
    %cst_7 = arith.constant 0.000000e+00 : f32
    %16 = vector.broadcast %cst_7 : f32 to vector<8x32xf32>
    %17 = arith.cmpf oge, %7, %16 : vector<8x32xf32>
    %cst_8 = arith.constant 1.000000e+00 : f32
    %18 = vector.broadcast %cst_8 : f32 to vector<8x32xf32>
    %19 = arith.subf %18, %15 : vector<8x32xf32>
    %20 = arith.select %17, %19, %15 : vector<8x32xi1>, vector<8x32xf32>
    %cst_9 = arith.constant 0.000000e+00 : f32
    %21 = vector.broadcast %cst_9 : f32 to vector<8x32xf32>
    %22 = arith.cmpf oge, %7, %21 : vector<8x32xf32>
    %cst_10 = arith.constant 1.000000e+00 : f32
    %23 = vector.broadcast %cst_10 : f32 to vector<8x32xf32>
    %24 = arith.subf %23, %15 : vector<8x32xf32>
    %25 = arith.select %22, %15, %24 : vector<8x32xi1>, vector<8x32xf32>
    %26 = math.absf %8 : vector<8x32xf32>
    %cst_11 = arith.constant 0.000000e+00 : f32
    %27 = vector.broadcast %cst_11 : f32 to vector<8x32xf32>
    %28 = arith.subf %27, %26 : vector<8x32xf32>
    %29 = math.exp %28 : vector<8x32xf32>
    %cst_12 = arith.constant 0.000000e+00 : f32
    %30 = vector.broadcast %cst_12 : f32 to vector<8x32xf32>
    %31 = arith.cmpf oge, %8, %30 : vector<8x32xf32>
    %cst_13 = arith.constant 5.000000e-01 : f32
    %32 = vector.broadcast %cst_13 : f32 to vector<8x32xf32>
    %33 = arith.addf %8, %32 : vector<8x32xf32>
    %cst_14 = arith.constant 1.000000e+00 : f32
    %34 = vector.broadcast %cst_14 : f32 to vector<8x32xf32>
    %35 = arith.addf %34, %29 : vector<8x32xf32>
    %36 = arith.divf %29, %35 : vector<8x32xf32>
    %37 = arith.select %31, %33, %36 : vector<8x32xi1>, vector<8x32xf32>
    %38 = arith.mulf %20, %37 : vector<8x32xf32>
    %39 = tpu.iota {dimensions = array<i32: 1>} : vector<1x8x32xi32>
    %40 = vector.shape_cast %39 : vector<1x8x32xi32> to vector<8x32xi32>
    %c1_i32 = arith.constant 1 : i32
    %41 = vector.broadcast %c1_i32 : i32 to vector<8x32xi32>
    %42 = arith.cmpi sge, %40, %41 : vector<8x32xi32>
    %c1_i32_15 = arith.constant 1 : i32
    %43 = tpu.dynamic_rotate %25 by %c1_i32_15 dim 0 : vector<8x32xf32>, i32 -> vector<8x32xf32>
    %cst_16 = arith.constant 1.000000e+00 : f32
    %44 = vector.broadcast %cst_16 : f32 to vector<8x32xf32>
    %45 = arith.select %42, %43, %44 : vector<8x32xi1>, vector<8x32xf32>
    %c1_i32_17 = arith.constant 1 : i32
    %46 = tpu.dynamic_rotate %38 by %c1_i32_17 dim 0 : vector<8x32xf32>, i32 -> vector<8x32xf32>
    %cst_18 = arith.constant 0.000000e+00 : f32
    %47 = vector.broadcast %cst_18 : f32 to vector<8x32xf32>
    %48 = arith.select %42, %46, %47 : vector<8x32xi1>, vector<8x32xf32>
    %49 = arith.mulf %25, %48 : vector<8x32xf32>
    %50 = arith.addf %49, %38 : vector<8x32xf32>
    %51 = arith.mulf %25, %45 : vector<8x32xf32>
    %c2_i32 = arith.constant 2 : i32
    %52 = vector.broadcast %c2_i32 : i32 to vector<8x32xi32>
    %53 = arith.cmpi sge, %40, %52 : vector<8x32xi32>
    %c2_i32_19 = arith.constant 2 : i32
    %54 = tpu.dynamic_rotate %51 by %c2_i32_19 dim 0 : vector<8x32xf32>, i32 -> vector<8x32xf32>
    %cst_20 = arith.constant 1.000000e+00 : f32
    %55 = vector.broadcast %cst_20 : f32 to vector<8x32xf32>
    %56 = arith.select %53, %54, %55 : vector<8x32xi1>, vector<8x32xf32>
    %c2_i32_21 = arith.constant 2 : i32
    %57 = tpu.dynamic_rotate %50 by %c2_i32_21 dim 0 : vector<8x32xf32>, i32 -> vector<8x32xf32>
    %cst_22 = arith.constant 0.000000e+00 : f32
    %58 = vector.broadcast %cst_22 : f32 to vector<8x32xf32>
    %59 = arith.select %53, %57, %58 : vector<8x32xi1>, vector<8x32xf32>
    %60 = arith.mulf %51, %59 : vector<8x32xf32>
    %61 = arith.addf %60, %50 : vector<8x32xf32>
    %62 = arith.mulf %51, %56 : vector<8x32xf32>
    %c4_i32 = arith.constant 4 : i32
    %63 = vector.broadcast %c4_i32 : i32 to vector<8x32xi32>
    %64 = arith.cmpi sge, %40, %63 : vector<8x32xi32>
    %c4_i32_23 = arith.constant 4 : i32
    %65 = tpu.dynamic_rotate %62 by %c4_i32_23 dim 0 : vector<8x32xf32>, i32 -> vector<8x32xf32>
    %cst_24 = arith.constant 1.000000e+00 : f32
    %66 = vector.broadcast %cst_24 : f32 to vector<8x32xf32>
    %67 = arith.select %64, %65, %66 : vector<8x32xi1>, vector<8x32xf32>
    %c4_i32_25 = arith.constant 4 : i32
    %68 = tpu.dynamic_rotate %61 by %c4_i32_25 dim 0 : vector<8x32xf32>, i32 -> vector<8x32xf32>
    %cst_26 = arith.constant 0.000000e+00 : f32
    %69 = vector.broadcast %cst_26 : f32 to vector<8x32xf32>
    %70 = arith.select %64, %68, %69 : vector<8x32xi1>, vector<8x32xf32>
    %71 = arith.mulf %62, %70 : vector<8x32xf32>
    %72 = arith.addf %71, %61 : vector<8x32xf32>
    %73 = arith.mulf %62, %67 : vector<8x32xf32>
    %74 = vector.shape_cast %73 : vector<8x32xf32> to vector<1x8x32xf32>
    %75 = vector.shape_cast %72 : vector<8x32xf32> to vector<1x8x32xf32>
    %c0_27 = arith.constant 0 : index
    %c0_28 = arith.constant 0 : index
    %c0_29 = arith.constant 0 : index
    %76 = vector.load %arg6[%c0_27, %c0_28, %c0_29] : memref<1x1x32xf32, #tpu.memory_space<vmem>>, vector<1x1x32xf32>
    %77 = vector.broadcast %76 : vector<1x1x32xf32> to vector<1x8x32xf32>
    %78 = arith.mulf %74, %77 : vector<1x8x32xf32>
    %79 = arith.addf %78, %75 : vector<1x8x32xf32>
    %c0_30 = arith.constant 0 : index
    %c0_31 = arith.constant 0 : index
    %c0_32 = arith.constant 0 : index
    %80 = vector.load %arg5[%c0_30, %c0_31, %c0_32] : memref<1x8x32xf32, #tpu.memory_space<vmem>>, vector<1x8x32xf32>
    tpu.vector_store %arg5[%c0_30, %c0_31, %c0_32], %79 {strides = array<i32>} : memref<1x8x32xf32, #tpu.memory_space<vmem>>, vector<1x8x32xf32>,
    %81 = vector.extract_strided_slice %79 {offsets = [0, 7, 0], sizes = [1, 1, 32], strides = [1, 1, 1]} : vector<1x8x32xf32> to vector<1x1x32xf32>
    %c0_33 = arith.constant 0 : index
    %c0_34 = arith.constant 0 : index
    %c0_35 = arith.constant 0 : index
    %82 = vector.load %arg6[%c0_33, %c0_34, %c0_35] : memref<1x1x32xf32, #tpu.memory_space<vmem>>, vector<1x1x32xf32>
    tpu.vector_store %arg6[%c0_33, %c0_34, %c0_35], %81 {strides = array<i32>} : memref<1x1x32xf32, #tpu.memory_space<vmem>>, vector<1x1x32xf32>,
    return
  }
  func.func @transform_0(%arg0: i32, %arg1: i32, %arg2: i32) -> (i32, i32, i32) {
    %c0_i32 = arith.constant 0 : i32
    %c0_i32_0 = arith.constant 0 : i32
    return %arg0, %arg2, %c0_i32 : i32, i32, i32
  }
  func.func @transform_1(%arg0: i32, %arg1: i32, %arg2: i32) -> (i32, i32) {
    %c0_i32 = arith.constant 0 : i32
    %c0_i32_0 = arith.constant 0 : i32
    return %c0_i32, %arg1 : i32, i32
  }
  func.func @transform_2(%arg0: i32, %arg1: i32, %arg2: i32) -> (i32, i32, i32) {
    %c0_i32 = arith.constant 0 : i32
    return %arg0, %arg2, %arg1 : i32, i32, i32
  }
}

</mosaic_0001>

<bundles_post_ra>
// kernel: tpu_custom_call.1
= control target key start
LH: loop header
LB: loop body
LE: loop exit
PB: predicated region body
PF: predicated region fallthrough
CT: control target
= control target key end

     0   :  { %7 = vsyncpa [#allocation4], 0  ;;  %s974_s0 = inlined_call_operand.hbm [shape: f32[2,8,32], index: 0, kind: input, shape index: {}]   ;;  %s975_s1 = inlined_call_operand.hbm [shape: f32[32,64], index: 1, kind: input, shape index: {}]   ;;  %s976_s2 = inlined_call_operand.hbm [shape: f32[2,8,32], index: 2, kind: output, shape index: {}]  }
   0x1   :  { %9 = vsyncpa [#allocation4 + $0x1], 0 }
   0x2   :  { %10 = vsyncpa [#allocation7], 0 }
   0x3   :  { %11 = vsyncpa [#allocation5], 0 }
   0x4   :  { %13 = vsyncpa [#allocation5 + $0x1], 0  ;;  %s754_s9 = smov 0   ;;  %s756_s10 = smov 0  }
   0x5   :  { %s758_s11 = smov 0   ;;  %s760_s12 = smov 0  }
   0x6   :  { %s762_s13 = smov 0   ;;  %s764_s14 = smov 0  }
   0x7 LB: > { %s460_s15 = sadd.s32 4294967295, %s727_s14   ;;  %s461_s16 = sadd.s32 4294967294, %s727_s14   ;;  %s727_s14 = sphi %s764_s14, %s19_s14   ;;  %s723_s13 = sphi %s762_s13, %s1000_s13   ;;  %s719_s12 = sphi %s760_s12, %s999_s12   ;;  %s715_s11 = sphi %s758_s11, %s998_s11   ;;  %s711_s10 = sphi %s756_s10, %s997_s10   ;;  %s707_s9 = sphi %s754_s9, %s996_s9  }
   0x8   : > { %p60_p0 = scmp.ne.s32.totalorder %s711_s10, %s707_s9  ;;  %p788_p1 = scmp.eq.s32.totalorder %s460_s15, 0 }
   0x9   : > { %p792_p2 = scmp.eq.s32.totalorder %s460_s15, 1  ;;  %p120_p3 = scmp.eq.s32.totalorder %s461_s16, 1 }
   0xa   : > { %s981_s17 = scalar_select %p788_p1, 1, 0 }
   0xb   : > { %s982_s18 = scalar_select %p792_p2, 1, 0 }
   0xc   : > { %p798_p4 = por %p788_p1, %p60_p0  ;;  %p462_p5 = scmp.ge.s32.totalorder %s727_s14, 1 }
   0xd   : > { %p803_p6 = por %p120_p3, %p60_p0  ;;  %p127_p7 = scmp.lt.s32.totalorder %s727_s14, 3 }
   0xe   : > { %s983_s19 = scalar_select %p798_p4, 1, 0 }
   0xf   : > { %s984_s20 = scalar_select %p803_p6, 1, 0 }
  0x10   : > { %p808_p8 = pnand %p462_p5, %p127_p7  ;;  %s729_s22 = smov [#allocation6]  }
  0x11   : > { %s141_s23 = sshll.u32 %s729_s22, 4  ;;  %s38_s25 = sadd.s32 1, %s723_s13  ;;  %s142_s23 = int_to_ptr.vmem [resolvable:$true] %s141_s23 }
  0x12   : > { %s985_s21 = scalar_select %p808_p8, 1, 0 }
  0x13   : > { %p507_p9 = pneg %p808_p8  ;;  %s583_s28 = scalar_lea.hbm %s975_s1, 512 }
  0x14   : > { %p584_p12 = scmp.ne.s32.totalorder %s975_s1, %s583_s28  ;;  %p590_p5 = scmp.lt.u32.totalorder %s583_s28, %s975_s1 }
  0x15   : > { %p817_p11 = pnand %p507_p9, %p788_p1 }
  0x17   : > { %p585_p13 = pneg %p817_p11 }
  0x19   : > { %p586_p0 = pnand %p585_p13, %p584_p12 }
  0x1b   : > { %p587_p3 = pneg %p586_p0 }
  0x1d   : > { %p592_p7 = pnand %p590_p5, %p587_p3 }
  0x1f   : > { %595 = shalt.err (!%p592_p7)
}
  0x20   : > { %s596_s5 = scalar_lea.vmem %s142_s23, 512  ;;  %p604_p1 = scmp.lt.s32.totalorder %s142_s23, %s142_s23 }
  0x21   : > { %p597_p9 = scmp.ne.s32.totalorder %s142_s23, %s596_s5  ;;  %p605_p4 = scmp.lt.s32.totalorder %s596_s5, %s596_s5 }
  0x23   : > { %p599_p10 = pnand %p597_p9, %p585_p13  ;;  %p606_p8 = por %p605_p4, %p604_p1 }
  0x25   : > { %p600_p6 = pneg %p599_p10 }
  0x27   : > { %p607_p2 = pnand %p606_p8, %p600_p6 }
  0x29   : > { %610 = shalt.err (!%p607_p2)
}
  0x2a   : > { %s730_s6 = smov 128   ;;  %s731_s7 = smov 8  }
  0x2b   : > { %510 = dma.hbm_to_vmem [thread:$0]  (!%p817_p11), %s975_s1, 512, %s142_s23, [#allocation7], %s730_s6, %s730_s6, %s731_s7  }
  0x2c   : > { %p40_p1 = scmp.ge.s32.totalorder %s38_s25, 2  ;;  %s47_s16 = sadd.s32 1, %s715_s11 }
  0x2d   : > { %p54_p2 = scmp.ne.s32.totalorder %s715_s11, %s711_s10  ;;  %p55_p4 = scmp.eq.s32.totalorder %s727_s14, 0 }
  0x2e   : > { %s1002_s25 = smov (%p40_p1, %s38_s25), 0  ;;  %p988_p8 = scmp.ne.s32.totalorder %s982_s18, 0 }
  0x2f   : > { %p844_p6 = por %p55_p4, %p54_p2  ;;  %s42_s24 = ssub.s32 %s723_s13, %s1002_s25 }
  0x30   : > { %p850_p10 = por %p988_p8, %p54_p2  ;;  %p520_p12 = scmp.lt.s32.totalorder %s727_s14, 2 }
  0x31   : > { %p45_p11 = scmp.eq.s32.totalorder %s42_s24, 0  ;;  %s155_s23 = sand.u32 1, %s715_s11  }
  0x32   : > { %s465_s27 = sshll.u32 %s155_s23, 3  ;;  %s466_s29 = sshll.u32 %s723_s13, 7 }
  0x33   : > { %s859_s28 = scalar_select %p45_p11, %s715_s11, %s47_s16  }
  0x34   : > { %s865_s4 = scalar_lea.hbm %s974_s0, %s466_s29  ;;  %s159_s18 = scalar_lea.vmem [#allocation3], %s465_s27 }
  0x35   : > { %s167_s5 = sshll.u32 %s159_s18, 4  ;;  %p871_p13 = pnand %p520_p12, %p844_p6  ;;  %s867_s5 = int_to_ptr.vmem [resolvable:$true] %s167_s5 }
  0x36   : > { %s156_s7 = scalar_lea.sflag [#allocation4], %s155_s23  ;;  %s611_s8 = scalar_lea.hbm %s865_s4, 128 }
  0x37   : > { %p612_p0 = scmp.ne.s32.totalorder %s865_s4, %s611_s8  ;;  %p613_p3 = pneg %p871_p13 }
  0x38   : > { %s616_s24 = scalar_lea.hbm %s974_s0, 256  ;;  %p617_p9 = scmp.lt.u32.totalorder %s865_s4, %s974_s0 }
  0x39   : > { %p614_p5 = pnand %p613_p3, %p612_p0  ;;  %p618_p1 = scmp.lt.u32.totalorder %s616_s24, %s611_s8 }
  0x3a   : > { %p620_p4 = scmp.lt.u32.totalorder %s611_s8, %s865_s4 }
  0x3b   : > { %p615_p7 = pneg %p614_p5  ;;  %p619_p2 = por %p618_p1, %p617_p9 }
  0x3d   : > { %p621_p6 = por %p620_p4, %p619_p2 }
  0x3f   : > { %p622_p8 = pnand %p621_p6, %p615_p7 }
  0x41   : > { %625 = shalt.err (!%p622_p8)
}
  0x42   : > { %s626_s23 = scalar_lea.vmem %s867_s5, 128  ;;  %s732_s29 = smov [#allocation3]  }
  0x43   : > { %p627_p12 = scmp.ne.s32.totalorder %s867_s5, %s626_s23  ;;  %s631_s30 = sshll.u32 %s732_s29, 4  ;;  %s632_s30 = int_to_ptr.vmem [resolvable:$false] %s631_s30 }
  0x44   : > { %s633_s3 = scalar_lea.vmem %s632_s30, 256  ;;  %p634_p5 = scmp.lt.s32.totalorder %s867_s5, %s632_s30 }
  0x45   : > { %p629_p11 = pnand %p627_p12, %p613_p3  ;;  %p635_p9 = scmp.lt.s32.totalorder %s633_s3, %s626_s23 }
  0x47   : > { %p630_p0 = pneg %p629_p11  ;;  %p636_p1 = por %p635_p9, %p634_p5 }
  0x49   : > { %p637_p2 = pnand %p636_p1, %p630_p0 }
  0x4b   : > { %640 = shalt.err (!%p637_p2)
}
  0x4c   : > { %514 = dma.hbm_to_vmem [thread:$0]  (!%p871_p13), %s865_s4, 128, %s867_s5, %s156_s7  }
  0x4d   : > { %p991_p7 = scmp.ne.s32.totalorder %s985_s21, 0 }
  0x4e   : > { %s903_s18 = sand.u32 (!%p991_p7), 1, %s711_s10   ;;  %p992_p3 = scmp.ne.s32.totalorder (!%p991_p7), %s983_s19, 0 }
  0x4f   : > { %176 = sbr.rel (%p991_p7) target bundleno = 501 (0x1f5), region = 28  ;;  %s468_s8 = sshll.u32 (!%p991_p7), %s903_s18, 3 }
  0x50   : > { %s179_s15 = scalar_lea.sflag (!%p991_p7), [#allocation4], %s903_s18  ;;  %s182_s16 = scalar_lea.vmem (!%p991_p7), [#allocation3], %s468_s8 }
  0x56   : > { %694 = dma.done.wait (%p992_p3), %s179_s15, 128  }
  0x57   : > { %696 = vsyncadd (%p992_p3), %s179_s15, 4294967168  ;;  %p993_p13 = scmp.ne.s32.totalorder %s981_s17, 0 }
  0x59   : > { %698 = dma.done.wait (%p993_p13), [#allocation7], 512  }
  0x5a   : > { %700 = vsyncadd (%p993_p13), [#allocation7], 4294966784  ;;  %v733_v0 = vmov 0.0|0.0   ;;  %vm734_vm0 = vmmov 0   ;;  %v735_v1 = vmov 0.0   ;;  %v214_v2 = vld [vmem:[#allocation6] sm:$0xff]  ;;  %v310_v24 = vlaneseq }
  0x5b   : > { %493 = vmatprep.subr.bf16.mxu0 %v733_v0  ;;  %490 = vmatprep.mubr.msk.f32.mxu0 %vm734_vm0, %v735_v1  ;;  %v215_v3 = vld [vmem:[#allocation6 + $0x8] sm:$0xff]  ;;  %v216_v4 = vld [vmem:[#allocation6 + $0x10] sm:$0xff]  ;;  %v217_v6 = vld [vmem:[#allocation6 + $0x18] sm:$0xff]  ;;  %vm218_vm1 = vcmask 261120   ;;  %vm211_vm2 = vcmask 253952   ;;  %v736_v9 = vmov 0.5  }
  0x5c   : > { %v494_v5 = vpack.c.bf16 %v215_v3, %v214_v2  ;;  %v497_v7 = vpack.c.bf16 %v217_v6, %v216_v4  ;;  %v213_v8 = vld [vmem:[%s182_s16] sm:$0xff]  ;;  %212 = vst.msk [vmem:[#allocation2] sm:$0x1] %vm211_vm2, %v736_v9  ;;  %s737_s17 = smov 96   ;;  %v311_v25 = vshrl.u32 %v310_v24, 7  ;;  %s474_s19 = sshll.u32 %s719_s12, 7 }
  0x5d   : > { %s206_s21 = scalar_lea.vmem [#allocation8], %s468_s8  ;;  %vm346_vm7 = vcmask 261127   ;;  %s924_s7 = scalar_lea.hbm %s976_s2, %s474_s19 }
  0x5e   : > { %495 = vmatpush3.bf16.msra.mxu0 %v494_v5  ;;  %vm312_vm4 = vcmp.ge.s32.totalorder %v311_v25, 1  ;;  %vm320_vm5 = vcmp.ge.s32.totalorder %v311_v25, 2  ;;  %vm328_vm6 = vcmp.ge.s32.totalorder %v311_v25, 4  ;;  %s364_s4 = sshll.u32 %s206_s21, 4  ;;  %s349_s12 = scalar_lea.sflag [#allocation5], %s903_s18  ;;  %s926_s4 = int_to_ptr.vmem [resolvable:$true] %s364_s4 }
  0x5f   : > { %496 = vmatprep.subr.bf16.mxu0 %v733_v0  ;;  %s641_s24 = scalar_lea.vmem %s926_s4, 128  ;;  %s738_s22 = smov [#allocation8]  }
  0x60   : > { %p642_p4 = scmp.ne.s32.totalorder %s926_s4, %s641_s24  ;;  %s645_s27 = sshll.u32 %s738_s22, 4  ;;  %s646_s27 = int_to_ptr.vmem [resolvable:$false] %s645_s27 }
  0x61   : > { %s647_s23 = scalar_lea.vmem %s646_s27, 256  ;;  %p648_p12 = scmp.lt.s32.totalorder %s926_s4, %s646_s27 }
  0x62   : > { %498 = vmatpush3.bf16.msra.mxu0 %v497_v7  ;;  %p643_p6 = pnand %p642_p4, %p850_p10  ;;  %p649_p11 = scmp.lt.s32.totalorder %s647_s23, %s641_s24 }
  0x63   : > { %v472_v47 = vld [vmem:[#allocation2] ss:$0 sm:$0xff] }
  0x64   : > { %p644_p8 = pneg %p643_p6  ;;  %p650_p0 = por %p649_p11, %p648_p12 }
  0x65   : > { %491 = vmatmul.mubr.msk.f32.vlgmr.msra.gmra.mrb[0].mxu0 %vm218_vm1, %v213_v8 }
  0x66   : > { %p651_p5 = pnand %p650_p0, %p644_p8 }
 0x138   : > { %v288_v10 = vpop.f32.mrb[0].mxu0 }
 0x139   : > { %v292_v11 = vand.u32 2147483647, %v288_v10  ;;  %v492_v12 = vpop.f32.mrb[1].mxu0  ;;  %v303_v18 = vadd.f32 0.5, %v288_v10  ;;  %vm299_vm3 = vcmp.ge.f32.partialorder %v288_v10, 0.0 }
 0x13b   : > { %v293_v13 = vsub.f32 0.0, %v292_v11 }
 0x13d   : > { %v294_v14 = vmul.f32 1.442695, %v293_v13 }
 0x13f   : > { %579 = vpow2.f32 %v294_v14 }
 0x149   : > { %v580_v15 = vpop.eup %579 }
 0x14a   : > { %v296_v16 = vadd.f32 1.0, %v580_v15 }
 0x14c   : > { %581 = vrcp.f32 %v296_v16 }
 0x156   : > { %v582_v17 = vpop.eup %581 }
 0x157   : > { %v298_v19 = vmul.f32 %v582_v17, %v580_v15 }
 0x159   : > { %v300_v20 = vsub.f32 1.0, %v298_v19  ;;  %v304_v21 = vsel %vm299_vm3, %v303_v18, %v298_v19 }
 0x15a   : > { %306 = vrot.lane.b32.xlu0 %v304_v21, %s737_s17 }
 0x15b   : > { %v302_v22 = vsel %vm299_vm3, %v298_v19, %v300_v20  ;;  %v301_v23 = vsel %vm299_vm3, %v300_v20, %v298_v19 }
 0x15c   : > { %v313_v26 = vrot.slane %v302_v22, 7 }
 0x15e   : > { %v314_v27 = vsel %vm312_vm4, %v313_v26, 1.0 }
 0x15f   : > { %v319_v28 = vmul.f32 %v314_v27, %v302_v22 }
 0x161   : > { %v321_v30 = vrot.slane %v319_v28, 6 }
 0x163   : > { %v322_v33 = vsel %vm320_vm5, %v321_v30, 1.0 }
 0x164   : > { %v327_v36 = vmul.f32 %v322_v33, %v319_v28 }
 0x166   : > { %v329_v39 = vrot.slane %v327_v36, 4 }
 0x168   : > { %v330_v43 = vsel %vm328_vm6, %v329_v39, 1.0 }
 0x169   : > { %v335_v45 = vmul.f32 %v330_v43, %v327_v36 }
 0x16b   : > { %v343_v50 = vmul.f32 %v472_v47, %v335_v45 }
 0x1cc   : > { %v307_v29 = vpop.permute.xlu0 %306 }
 0x1cd   : > { %v309_v31 = vmul.f32 %v307_v29, %v301_v23 }
 0x1cf   : > { %v315_v32 = vrot.slane %v309_v31, 7 }
 0x1d1   : > { %v316_v34 = vsel %vm312_vm4, %v315_v32, 0.0 }
 0x1d2   : > { %v317_v35 = vmul.f32 %v316_v34, %v302_v22 }
 0x1d4   : > { %v318_v37 = vadd.f32 %v317_v35, %v309_v31 }
 0x1d6   : > { %v323_v38 = vrot.slane %v318_v37, 6 }
 0x1d8   : > { %v324_v40 = vsel %vm320_vm5, %v323_v38, 0.0 }
 0x1d9   : > { %v325_v41 = vmul.f32 %v324_v40, %v319_v28 }
 0x1db   : > { %v326_v42 = vadd.f32 %v325_v41, %v318_v37 }
 0x1dd   : > { %v331_v44 = vrot.slane %v326_v42, 4 }
 0x1df   : > { %v332_v46 = vsel %vm328_vm6, %v331_v44, 0.0 }
 0x1e0   : > { %v333_v48 = vmul.f32 %v332_v46, %v327_v36 }
 0x1e2   : > { %v334_v49 = vadd.f32 %v333_v48, %v326_v42 }
 0x1e4   : > { %v344_v51 = vadd.f32 %v343_v50, %v334_v49 }
 0x1e6   : > { %347 = vst.msk [vmem:[#allocation2 - $0x7] sm:$0x80] %vm346_vm7, %v344_v51 }
 0x1e7   : > { %345 = vst.msk [vmem:[%s206_s21] sm:$0xff] %vm218_vm1, %v344_v51 }
 0x1e8   : > { %654 = shalt.err (!%p651_p5)
}
 0x1e9   : > { %s655_s29 = scalar_lea.hbm %s924_s7, 128  ;;  %s659_s18 = scalar_lea.hbm %s976_s2, 256 }
 0x1ea   : > { %p656_p9 = scmp.ne.s32.totalorder %s924_s7, %s655_s29  ;;  %p660_p7 = scmp.lt.u32.totalorder %s924_s7, %s976_s2 }
 0x1eb   : > { %p661_p3 = scmp.lt.u32.totalorder %s659_s18, %s655_s29  ;;  %p663_p4 = scmp.lt.u32.totalorder %s655_s29, %s924_s7 }
 0x1ec   : > { %p657_p1 = pnand %p656_p9, %p850_p10 }
 0x1ed   : > { %p662_p13 = por %p661_p3, %p660_p7 }
 0x1ee   : > { %p658_p2 = pneg %p657_p1 }
 0x1ef   : > { %p664_p6 = por %p663_p4, %p662_p13 }
 0x1f1   : > { %p665_p8 = pnand %p664_p6, %p658_p2 }
 0x1f3   : > { %668 = shalt.err (!%p665_p8)
}
 0x1f4   : > { %505 = dma.vmem_to_hbm [thread:$0]  (%p850_p10), %s926_s4, 128, %s924_s7, %s349_s12  }
 0x1f5 PF: > { %s376_s16 = sand.u32 1, %s707_s9   ;;  %p994_p12 = scmp.ne.s32.totalorder %s984_s20, 0 }
 0x1f6   : > { %p995_p11 = scmp.ge.s32.totalorder %s727_s14, 2  ;;  %s377_s17 = scalar_lea.sflag [#allocation5], %s376_s16 }
 0x1f8   : > { %p516_p0 = pnand %p995_p11, %p994_p12 }
 0x1fa   : > { %702 = dma.done.wait (!%p516_p0), %s377_s17, 128  }
 0x1fb   : > { %704 = vsyncadd (!%p516_p0), %s377_s17, 4294967168  ;;  %s19_s14 = sadd.s32 1, %s727_s14   ;;  %s996_s9 = smov %s711_s10 }
 0x1fc   : > { %p16_p5 = scmp.ge.s32.totalorder %s19_s14, 4   ;;  %s997_s10 = smov %s715_s11 }
 0x1fd   : > { %s998_s11 = smov %s859_s28  ;;  %s999_s12 = smov %s723_s13 }
 0x1fe   : > { %s1000_s13 = smov %s1002_s25  ;;  %18 = sbr.rel (!%p16_p5) target bundleno = 7 (0x7), region = 82 }
 0x205   :  { %382 = vsyncpa [#allocation4], 1 }
 0x206   :  { %384 = vsyncpa [#allocation4 + $0x1], 1 }
 0x207   :  { %385 = vsyncpa [#allocation7], 1 }
 0x208   :  { %386 = vsyncpa [#allocation5], 1 }
 0x209   :  { %388 = vsyncpa [#allocation5 + $0x1], 1 }

// kernel: tpu_custom_call.1
= control target key start
LH: loop header
LB: loop body
LE: loop exit
PB: predicated region body
PF: predicated region fallthrough
CT: control target
= control target key end

     0   :  { %7 = vsyncpa [#allocation4], 0  ;;  %s974_s0 = inlined_call_operand.hbm [shape: f32[2,8,32], index: 0, kind: input, shape index: {}]   ;;  %s975_s1 = inlined_call_operand.hbm [shape: f32[32,64], index: 1, kind: input, shape index: {}]   ;;  %s976_s2 = inlined_call_operand.hbm [shape: f32[2,8,32], index: 2, kind: output, shape index: {}]  }
   0x1   :  { %9 = vsyncpa [#allocation4 + $0x1], 0 }
   0x2   :  { %10 = vsyncpa [#allocation7], 0 }
   0x3   :  { %11 = vsyncpa [#allocation5], 0 }
   0x4   :  { %13 = vsyncpa [#allocation5 + $0x1], 0  ;;  %s754_s9 = smov 0   ;;  %s756_s10 = smov 0  }
   0x5   :  { %s758_s11 = smov 0   ;;  %s760_s12 = smov 0  }
   0x6   :  { %s762_s13 = smov 0   ;;  %s764_s14 = smov 0  }
   0x7 LB: > { %s460_s15 = sadd.s32 4294967295, %s727_s14   ;;  %s461_s16 = sadd.s32 4294967294, %s727_s14   ;;  %s727_s14 = sphi %s764_s14, %s19_s14   ;;  %s723_s13 = sphi %s762_s13, %s1000_s13   ;;  %s719_s12 = sphi %s760_s12, %s999_s12   ;;  %s715_s11 = sphi %s758_s11, %s998_s11   ;;  %s711_s10 = sphi %s756_s10, %s997_s10   ;;  %s707_s9 = sphi %s754_s9, %s996_s9  }
   0x8   : > { %p60_p0 = scmp.ne.s32.totalorder %s711_s10, %s707_s9  ;;  %p788_p1 = scmp.eq.s32.totalorder %s460_s15, 0 }
   0x9   : > { %p792_p2 = scmp.eq.s32.totalorder %s460_s15, 1  ;;  %p120_p3 = scmp.eq.s32.totalorder %s461_s16, 1 }
   0xa   : > { %s981_s17 = scalar_select %p788_p1, 1, 0 }
   0xb   : > { %s982_s18 = scalar_select %p792_p2, 1, 0 }
   0xc   : > { %p798_p4 = por %p788_p1, %p60_p0  ;;  %p462_p5 = scmp.ge.s32.totalorder %s727_s14, 1 }
   0xd   : > { %p803_p6 = por %p120_p3, %p60_p0  ;;  %p127_p7 = scmp.lt.s32.totalorder %s727_s14, 3 }
   0xe   : > { %s983_s19 = scalar_select %p798_p4, 1, 0 }
   0xf   : > { %s984_s20 = scalar_select %p803_p6, 1, 0 }
  0x10   : > { %p808_p8 = pnand %p462_p5, %p127_p7  ;;  %s729_s22 = smov [#allocation6]  }
  0x11   : > { %s141_s23 = sshll.u32 %s729_s22, 4  ;;  %s38_s25 = sadd.s32 1, %s723_s13  ;;  %s142_s23 = int_to_ptr.vmem [resolvable:$true] %s141_s23 }
  0x12   : > { %s985_s21 = scalar_select %p808_p8, 1, 0 }
  0x13   : > { %p507_p9 = pneg %p808_p8  ;;  %s583_s28 = scalar_lea.hbm %s975_s1, 512 }
  0x14   : > { %p584_p12 = scmp.ne.s32.totalorder %s975_s1, %s583_s28  ;;  %p590_p5 = scmp.lt.u32.totalorder %s583_s28, %s975_s1 }
  0x15   : > { %p817_p11 = pnand %p507_p9, %p788_p1 }
  0x17   : > { %p585_p13 = pneg %p817_p11 }
  0x19   : > { %p586_p0 = pnand %p585_p13, %p584_p12 }
  0x1b   : > { %p587_p3 = pneg %p586_p0 }
  0x1d   : > { %p592_p7 = pnand %p590_p5, %p587_p3 }
  0x1f   : > { %595 = shalt.err (!%p592_p7)
}
  0x20   : > { %s596_s5 = scalar_lea.vmem %s142_s23, 512  ;;  %p604_p1 = scmp.lt.s32.totalorder %s142_s23, %s142_s23 }
  0x21   : > { %p597_p9 = scmp.ne.s32.totalorder %s142_s23, %s596_s5  ;;  %p605_p4 = scmp.lt.s32.totalorder %s596_s5, %s596_s5 }
  0x23   : > { %p599_p10 = pnand %p597_p9, %p585_p13  ;;  %p606_p8 = por %p605_p4, %p604_p1 }
  0x25   : > { %p600_p6 = pneg %p599_p10 }
  0x27   : > { %p607_p2 = pnand %p606_p8, %p600_p6 }
  0x29   : > { %610 = shalt.err (!%p607_p2)
}
  0x2a   : > { %s730_s6 = smov 128   ;;  %s731_s7 = smov 8  }
  0x2b   : > { %510 = dma.hbm_to_vmem [thread:$0]  (!%p817_p11), %s975_s1, 512, %s142_s23, [#allocation7], %s730_s6, %s730_s6, %s731_s7  }
  0x2c   : > { %p40_p1 = scmp.ge.s32.totalorder %s38_s25, 2  ;;  %s47_s16 = sadd.s32 1, %s715_s11 }
  0x2d   : > { %p54_p2 = scmp.ne.s32.totalorder %s715_s11, %s711_s10  ;;  %p55_p4 = scmp.eq.s32.totalorder %s727_s14, 0 }
  0x2e   : > { %s1002_s25 = smov (%p40_p1, %s38_s25), 0  ;;  %p988_p8 = scmp.ne.s32.totalorder %s982_s18, 0 }
  0x2f   : > { %p844_p6 = por %p55_p4, %p54_p2  ;;  %s42_s24 = ssub.s32 %s723_s13, %s1002_s25 }
  0x30   : > { %p850_p10 = por %p988_p8, %p54_p2  ;;  %p520_p12 = scmp.lt.s32.totalorder %s727_s14, 2 }
  0x31   : > { %p45_p11 = scmp.eq.s32.totalorder %s42_s24, 0  ;;  %s155_s23 = sand.u32 1, %s715_s11  }
  0x32   : > { %s465_s27 = sshll.u32 %s155_s23, 3  ;;  %s466_s29 = sshll.u32 %s723_s13, 7 }
  0x33   : > { %s859_s28 = scalar_select %p45_p11, %s715_s11, %s47_s16  }
  0x34   : > { %s865_s4 = scalar_lea.hbm %s974_s0, %s466_s29  ;;  %s159_s18 = scalar_lea.vmem [#allocation3], %s465_s27 }
  0x35   : > { %s167_s5 = sshll.u32 %s159_s18, 4  ;;  %p871_p13 = pnand %p520_p12, %p844_p6  ;;  %s867_s5 = int_to_ptr.vmem [resolvable:$true] %s167_s5 }
  0x36   : > { %s156_s7 = scalar_lea.sflag [#allocation4], %s155_s23  ;;  %s611_s8 = scalar_lea.hbm %s865_s4, 128 }
  0x37   : > { %p612_p0 = scmp.ne.s32.totalorder %s865_s4, %s611_s8  ;;  %p613_p3 = pneg %p871_p13 }
  0x38   : > { %s616_s24 = scalar_lea.hbm %s974_s0, 256  ;;  %p617_p9 = scmp.lt.u32.totalorder %s865_s4, %s974_s0 }
  0x39   : > { %p614_p5 = pnand %p613_p3, %p612_p0  ;;  %p618_p1 = scmp.lt.u32.totalorder %s616_s24, %s611_s8 }
  0x3a   : > { %p620_p4 = scmp.lt.u32.totalorder %s611_s8, %s865_s4 }
  0x3b   : > { %p615_p7 = pneg %p614_p5  ;;  %p619_p2 = por %p618_p1, %p617_p9 }
  0x3d   : > { %p621_p6 = por %p620_p4, %p619_p2 }
  0x3f   : > { %p622_p8 = pnand %p621_p6, %p615_p7 }
  0x41   : > { %625 = shalt.err (!%p622_p8)
}
  0x42   : > { %s626_s23 = scalar_lea.vmem %s867_s5, 128  ;;  %s732_s29 = smov [#allocation3]  }
  0x43   : > { %p627_p12 = scmp.ne.s32.totalorder %s867_s5, %s626_s23  ;;  %s631_s30 = sshll.u32 %s732_s29, 4  ;;  %s632_s30 = int_to_ptr.vmem [resolvable:$false] %s631_s30 }
  0x44   : > { %s633_s3 = scalar_lea.vmem %s632_s30, 256  ;;  %p634_p5 = scmp.lt.s32.totalorder %s867_s5, %s632_s30 }
  0x45   : > { %p629_p11 = pnand %p627_p12, %p613_p3  ;;  %p635_p9 = scmp.lt.s32.totalorder %s633_s3, %s626_s23 }
  0x47   : > { %p630_p0 = pneg %p629_p11  ;;  %p636_p1 = por %p635_p9, %p634_p5 }
  0x49   : > { %p637_p2 = pnand %p636_p1, %p630_p0 }
  0x4b   : > { %640 = shalt.err (!%p637_p2)
}
  0x4c   : > { %514 = dma.hbm_to_vmem [thread:$0]  (!%p871_p13), %s865_s4, 128, %s867_s5, %s156_s7  }
  0x4d   : > { %p991_p7 = scmp.ne.s32.totalorder %s985_s21, 0 }
  0x4e   : > { %s903_s18 = sand.u32 (!%p991_p7), 1, %s711_s10   ;;  %p992_p3 = scmp.ne.s32.totalorder (!%p991_p7), %s983_s19, 0 }
  0x4f   : > { %176 = sbr.rel (%p991_p7) target bundleno = 501 (0x1f5), region = 28  ;;  %s468_s8 = sshll.u32 (!%p991_p7), %s903_s18, 3 }
  0x50   : > { %s179_s15 = scalar_lea.sflag (!%p991_p7), [#allocation4], %s903_s18  ;;  %s182_s16 = scalar_lea.vmem (!%p991_p7), [#allocation3], %s468_s8 }
  0x56   : > { %694 = dma.done.wait (%p992_p3), %s179_s15, 128  }
  0x57   : > { %696 = vsyncadd (%p992_p3), %s179_s15, 4294967168  ;;  %p993_p13 = scmp.ne.s32.totalorder %s981_s17, 0 }
  0x59   : > { %698 = dma.done.wait (%p993_p13), [#allocation7], 512  }
  0x5a   : > { %700 = vsyncadd (%p993_p13), [#allocation7], 4294966784  ;;  %v733_v0 = vmov 0.0|0.0   ;;  %vm734_vm0 = vmmov 0   ;;  %v735_v1 = vmov 0.0   ;;  %v214_v2 = vld [vmem:[#allocation6] sm:$0xff]  ;;  %v310_v24 = vlaneseq }
  0x5b   : > { %493 = vmatprep.subr.bf16.mxu0 %v733_v0  ;;  %490 = vmatprep.mubr.msk.f32.mxu0 %vm734_vm0, %v735_v1  ;;  %v215_v3 = vld [vmem:[#allocation6 + $0x8] sm:$0xff]  ;;  %v216_v4 = vld [vmem:[#allocation6 + $0x10] sm:$0xff]  ;;  %v217_v6 = vld [vmem:[#allocation6 + $0x18] sm:$0xff]  ;;  %vm218_vm1 = vcmask 261120   ;;  %vm211_vm2 = vcmask 253952   ;;  %v736_v9 = vmov 0.5  }
  0x5c   : > { %v494_v5 = vpack.c.bf16 %v215_v3, %v214_v2  ;;  %v497_v7 = vpack.c.bf16 %v217_v6, %v216_v4  ;;  %v213_v8 = vld [vmem:[%s182_s16] sm:$0xff]  ;;  %212 = vst.msk [vmem:[#allocation2] sm:$0x1] %vm211_vm2, %v736_v9  ;;  %s737_s17 = smov 96   ;;  %v311_v25 = vshrl.u32 %v310_v24, 7  ;;  %s474_s19 = sshll.u32 %s719_s12, 7 }
  0x5d   : > { %s206_s21 = scalar_lea.vmem [#allocation8], %s468_s8  ;;  %vm346_vm7 = vcmask 261127   ;;  %s924_s7 = scalar_lea.hbm %s976_s2, %s474_s19 }
  0x5e   : > { %495 = vmatpush3.bf16.msra.mxu0 %v494_v5  ;;  %vm312_vm4 = vcmp.ge.s32.totalorder %v311_v25, 1  ;;  %vm320_vm5 = vcmp.ge.s32.totalorder %v311_v25, 2  ;;  %vm328_vm6 = vcmp.ge.s32.totalorder %v311_v25, 4  ;;  %s364_s4 = sshll.u32 %s206_s21, 4  ;;  %s349_s12 = scalar_lea.sflag [#allocation5], %s903_s18  ;;  %s926_s4 = int_to_ptr.vmem [resolvable:$true] %s364_s4 }
  0x5f   : > { %496 = vmatprep.subr.bf16.mxu0 %v733_v0  ;;  %s641_s24 = scalar_lea.vmem %s926_s4, 128  ;;  %s738_s22 = smov [#allocation8]  }
  0x60   : > { %p642_p4 = scmp.ne.s32.totalorder %s926_s4, %s641_s24  ;;  %s645_s27 = sshll.u32 %s738_s22, 4  ;;  %s646_s27 = int_to_ptr.vmem [resolvable:$false] %s645_s27 }
  0x61   : > { %s647_s23 = scalar_lea.vmem %s646_s27, 256  ;;  %p648_p12 = scmp.lt.s32.totalorder %s926_s4, %s646_s27 }
  0x62   : > { %498 = vmatpush3.bf16.msra.mxu0 %v497_v7  ;;  %p643_p6 = pnand %p642_p4, %p850_p10  ;;  %p649_p11 = scmp.lt.s32.totalorder %s647_s23, %s641_s24 }
  0x63   : > { %v472_v47 = vld [vmem:[#allocation2] ss:$0 sm:$0xff] }
  0x64   : > { %p644_p8 = pneg %p643_p6  ;;  %p650_p0 = por %p649_p11, %p648_p12 }
  0x65   : > { %491 = vmatmul.mubr.msk.f32.vlgmr.msra.gmra.mrb[0].mxu0 %vm218_vm1, %v213_v8 }
  0x66   : > { %p651_p5 = pnand %p650_p0, %p644_p8 }
 0x138   : > { %v288_v10 = vpop.f32.mrb[0].mxu0 }
 0x139   : > { %v292_v11 = vand.u32 2147483647, %v288_v10  ;;  %v492_v12 = vpop.f32.mrb[1].mxu0  ;;  %v303_v18 = vadd.f32 0.5, %v288_v10  ;;  %vm299_vm3 = vcmp.ge.f32.partialorder %v288_v10, 0.0 }
 0x13b   : > { %v293_v13 = vsub.f32 0.0, %v292_v11 }
 0x13d   : > { %v294_v14 = vmul.f32 1.442695, %v293_v13 }
 0x13f   : > { %579 = vpow2.f32 %v294_v14 }
 0x149   : > { %v580_v15 = vpop.eup %579 }
 0x14a   : > { %v296_v16 = vadd.f32 1.0, %v580_v15 }
 0x14c   : > { %581 = vrcp.f32 %v296_v16 }
 0x156   : > { %v582_v17 = vpop.eup %581 }
 0x157   : > { %v298_v19 = vmul.f32 %v582_v17, %v580_v15 }
 0x159   : > { %v300_v20 = vsub.f32 1.0, %v298_v19  ;;  %v304_v21 = vsel %vm299_vm3, %v303_v18, %v298_v19 }
 0x15a   : > { %306 = vrot.lane.b32.xlu0 %v304_v21, %s737_s17 }
 0x15b   : > { %v302_v22 = vsel %vm299_vm3, %v298_v19, %v300_v20  ;;  %v301_v23 = vsel %vm299_vm3, %v300_v20, %v298_v19 }
 0x15c   : > { %v313_v26 = vrot.slane %v302_v22, 7 }
 0x15e   : > { %v314_v27 = vsel %vm312_vm4, %v313_v26, 1.0 }
 0x15f   : > { %v319_v28 = vmul.f32 %v314_v27, %v302_v22 }
 0x161   : > { %v321_v30 = vrot.slane %v319_v28, 6 }
 0x163   : > { %v322_v33 = vsel %vm320_vm5, %v321_v30, 1.0 }
 0x164   : > { %v327_v36 = vmul.f32 %v322_v33, %v319_v28 }
 0x166   : > { %v329_v39 = vrot.slane %v327_v36, 4 }
 0x168   : > { %v330_v43 = vsel %vm328_vm6, %v329_v39, 1.0 }
 0x169   : > { %v335_v45 = vmul.f32 %v330_v43, %v327_v36 }
 0x16b   : > { %v343_v50 = vmul.f32 %v472_v47, %v335_v45 }
 0x1cc   : > { %v307_v29 = vpop.permute.xlu0 %306 }
 0x1cd   : > { %v309_v31 = vmul.f32 %v307_v29, %v301_v23 }
 0x1cf   : > { %v315_v32 = vrot.slane %v309_v31, 7 }
 0x1d1   : > { %v316_v34 = vsel %vm312_vm4, %v315_v32, 0.0 }
 0x1d2   : > { %v317_v35 = vmul.f32 %v316_v34, %v302_v22 }
 0x1d4   : > { %v318_v37 = vadd.f32 %v317_v35, %v309_v31 }
 0x1d6   : > { %v323_v38 = vrot.slane %v318_v37, 6 }
 0x1d8   : > { %v324_v40 = vsel %vm320_vm5, %v323_v38, 0.0 }
 0x1d9   : > { %v325_v41 = vmul.f32 %v324_v40, %v319_v28 }
 0x1db   : > { %v326_v42 = vadd.f32 %v325_v41, %v318_v37 }
 0x1dd   : > { %v331_v44 = vrot.slane %v326_v42, 4 }
 0x1df   : > { %v332_v46 = vsel %vm328_vm6, %v331_v44, 0.0 }
 0x1e0   : > { %v333_v48 = vmul.f32 %v332_v46, %v327_v36 }
 0x1e2   : > { %v334_v49 = vadd.f32 %v333_v48, %v326_v42 }
 0x1e4   : > { %v344_v51 = vadd.f32 %v343_v50, %v334_v49 }
 0x1e6   : > { %347 = vst.msk [vmem:[#allocation2 - $0x7] sm:$0x80] %vm346_vm7, %v344_v51 }
 0x1e7   : > { %345 = vst.msk [vmem:[%s206_s21] sm:$0xff] %vm218_vm1, %v344_v51 }
 0x1e8   : > { %654 = shalt.err (!%p651_p5)
}
 0x1e9   : > { %s655_s29 = scalar_lea.hbm %s924_s7, 128  ;;  %s659_s18 = scalar_lea.hbm %s976_s2, 256 }
 0x1ea   : > { %p656_p9 = scmp.ne.s32.totalorder %s924_s7, %s655_s29  ;;  %p660_p7 = scmp.lt.u32.totalorder %s924_s7, %s976_s2 }
 0x1eb   : > { %p661_p3 = scmp.lt.u32.totalorder %s659_s18, %s655_s29  ;;  %p663_p4 = scmp.lt.u32.totalorder %s655_s29, %s924_s7 }
 0x1ec   : > { %p657_p1 = pnand %p656_p9, %p850_p10 }
 0x1ed   : > { %p662_p13 = por %p661_p3, %p660_p7 }
 0x1ee   : > { %p658_p2 = pneg %p657_p1 }
 0x1ef   : > { %p664_p6 = por %p663_p4, %p662_p13 }
 0x1f1   : > { %p665_p8 = pnand %p664_p6, %p658_p2 }
 0x1f3   : > { %668 = shalt.err (!%p665_p8)
}
 0x1f4   : > { %505 = dma.vmem_to_hbm [thread:$0]  (%p850_p10), %s926_s4, 128, %s924_s7, %s349_s12  }
 0x1f5 PF: > { %s376_s16 = sand.u32 1, %s707_s9   ;;  %p994_p12 = scmp.ne.s32.totalorder %s984_s20, 0 }
 0x1f6   : > { %p995_p11 = scmp.ge.s32.totalorder %s727_s14, 2  ;;  %s377_s17 = scalar_lea.sflag [#allocation5], %s376_s16 }
 0x1f8   : > { %p516_p0 = pnand %p995_p11, %p994_p12 }
 0x1fa   : > { %702 = dma.done.wait (!%p516_p0), %s377_s17, 128  }
 0x1fb   : > { %704 = vsyncadd (!%p516_p0), %s377_s17, 4294967168  ;;  %s19_s14 = sadd.s32 1, %s727_s14   ;;  %s996_s9 = smov %s711_s10 }
 0x1fc   : > { %p16_p5 = scmp.ge.s32.totalorder %s19_s14, 4   ;;  %s997_s10 = smov %s715_s11 }
 0x1fd   : > { %s998_s11 = smov %s859_s28  ;;  %s999_s12 = smov %s723_s13 }
 0x1fe   : > { %s1000_s13 = smov %s1002_s25  ;;  %18 = sbr.rel (!%p16_p5) target bundleno = 7 (0x7), region = 82 }
 0x205   :  { %382 = vsyncpa [#allocation4], 1 }
 0x206   :  { %384 = vsyncpa [#allocation4 + $0x1], 1 }
 0x207   :  { %385 = vsyncpa [#allocation7], 1 }
 0x208   :  { %386 = vsyncpa [#allocation5], 1 }
 0x209   :  { %388 = vsyncpa [#allocation5 + $0x1], 1 }

</bundles_post_ra>
